<compile_context>
chip_gen: v5e
topology: v5e:2x2
jax: 0.10.0
libtpu: 0.0.40
codegen_flags: <defaults>
</compile_context>

<pallas_src>
import functools

import jax
import jax.numpy as jnp
from jax.experimental import pallas as pl
from jax.experimental.pallas import tpu as pltpu

_LANE = 128
_MIB = 1024 * 1024


def _round_up(x, m):
    return (x + m - 1) // m * m


def _vmem_capacity_bytes():
    """Physical VMEM per TensorCore (128 MiB v5e/v6e, 64 MiB v7x)."""
    try:
        info = pltpu.get_tpu_info()
        for name in ("vmem_capacity_bytes", "vmem_size_bytes", "vmem_bytes"):
            cap = getattr(info, name, None)
            if cap:
                return int(cap)
    except Exception:
        pass
    return 64 * _MIB  # conservative fallback (v7x-sized)


# --------------------------------------------------------------------------
# Fused fast path: whole (bb, C, Np) slab resident, X read from HBM once.
# --------------------------------------------------------------------------
def _fused_cam_kernel(gamma_ref, x_ref, o_ref, *, mm_dtype):
    x = x_ref[...]                                   # (bb, C, Np), native dtype
    xm = x.astype(mm_dtype)                          # no-op unless bf16 path
    # energy[b,c,d] = sum_n x[b,c,n] * x[b,d,n]  (padded columns are zero).
    energy = jnp.einsum('bcn,bdn->bcd', xm, xm,
                        preferred_element_type=jnp.float32)
    # softmax(rowmax(E) - E) == exp(rowmin(E) - E) / sum(...): one reduction.
    e_min = jnp.min(energy, axis=-1, keepdims=True)
    p = jnp.exp(e_min - energy)
    denom = jnp.sum(p, axis=-1, keepdims=True)
    attn = (p / denom).astype(mm_dtype)              # exact divide, once/block
    out = jnp.einsum('bcd,bdn->bcn', attn, xm,
                     preferred_element_type=jnp.float32)
    gamma = gamma_ref[0]
    o_ref[...] = (gamma * out + x.astype(jnp.float32)).astype(o_ref.dtype)


# --------------------------------------------------------------------------
# Two-phase fallback: N-tiled energy accumulation, then streamed apply.
# --------------------------------------------------------------------------
def _energy_attn_kernel(x_ref, attn_ref, acc_ref, *, mm_dtype):
    """Phase 1: accumulate energy = X @ X^T over N tiles, softmax at the end."""
    n = pl.program_id(1)
    x = x_ref[...].astype(mm_dtype)                  # (bb, C, tn)
    part = jnp.einsum('bcn,bdn->bcd', x, x,
                      preferred_element_type=jnp.float32)

    @pl.when(n == 0)
    def _():
        acc_ref[...] = part

    @pl.when(n > 0)
    def _():
        acc_ref[...] += part

    @pl.when(n == pl.num_programs(1) - 1)
    def _():
        energy = acc_ref[...]                        # (bb, C, C) f32
        e_min = jnp.min(energy, axis=-1, keepdims=True)
        p = jnp.exp(e_min - energy)
        denom = jnp.sum(p, axis=-1, keepdims=True)
        # Emit attention directly in the matmul dtype (bf16 for bf16 inputs):
        # halves the attn HBM round-trip and phase-2 VMEM footprint.
        attn_ref[...] = (p / denom).astype(attn_ref.dtype)


def _apply_attn_kernel(gamma_ref, attn_ref, x_ref, o_ref, *, mm_dtype):
    """Phase 2: out = gamma * (attn @ X) + X, streamed over N tiles."""
    x = x_ref[...]                                   # (bb, C, tn)
    attn = attn_ref[...]                             # already in mm_dtype
    out = jnp.einsum('bcd,bdn->bcn', attn, x.astype(mm_dtype),
                     preferred_element_type=jnp.float32)
    gamma = gamma_ref[0]
    o_ref[...] = (gamma * out + x.astype(jnp.float32)).astype(o_ref.dtype)


# --------------------------------------------------------------------------
# Wrapper
# --------------------------------------------------------------------------
def cam_module_forward(x, gamma, *, tile_n=None, b_block_cap=8,
                       use_bf16_matmul=False, fused=None):
    """CAM_Module.forward: x (B, C, H, W), gamma (1,) -> out (B, C, H, W)."""
    B, C, H, W = x.shape
    N = H * W
    dtype = x.dtype
    itemsize = jnp.dtype(dtype).itemsize

    # Matmul-operand / attention-matrix dtype. Optional bf16 path for f32
    # inputs (biggest win on compute-bound v5e); accumulation stays f32.
    mm_dtype = jnp.bfloat16 if (use_bf16_matmul and dtype == jnp.float32) else dtype
    mm_itemsize = jnp.dtype(mm_dtype).itemsize

    # Per-generation budgets.
    vmem_cap = _vmem_capacity_bytes()
    if vmem_cap >= 96 * _MIB:           # v5e / v6e: 128 MiB physical VMEM
        fused_budget = 96 * _MIB
        phase_cap = 100 * _MIB
        default_tile_n = 2048
    else:                               # v7x: 64 MiB physical VMEM
        fused_budget = 44 * _MIB
        phase_cap = 52 * _MIB
        default_tile_n = 512
    if tile_n is None:
        tile_n = default_tile_n

    # Batch blocking: pack several small-C batches per grid step (fills
    # sublanes / MXU rows, amortizes ~0.35us/step). cdiv + padding handles
    # prime/odd B. Keep >= 2 batch blocks when B >= 2 so the parallel axis can
    # shard across both v7x TensorCores.
    if C <= 128:
        bb = min(b_block_cap, B)
        if B >= 2:
            bb = min(bb, pl.cdiv(B, 2))
    else:
        bb = 1
    num_b = pl.cdiv(B, bb)
    b_pad = num_b * bb

    # Fused-path VMEM estimate (double-buffered in/out slabs + f32 temps).
    n_pad_full = _round_up(N, _LANE)
    x_slab = bb * C * n_pad_full * itemsize
    f32_tmp = bb * C * n_pad_full * 4              # f32 matmul result pre-cast
    attn_tmp = 3 * bb * C * C * 4                  # energy / exp / attn temps
    fused_est = 4 * x_slab + f32_tmp + attn_tmp + 2 * _MIB
    if fused is None:
        fused = fused_est <= fused_budget

    xr = x.reshape(B, C, N)

    if fused:
        # ------------- single-pass path: X read from HBM exactly once -------
        n_pad = n_pad_full
        if (b_pad, n_pad) != (B, N):
            xr = jnp.pad(xr, ((0, b_pad - B), (0, 0), (0, n_pad - N)))
        vmem_limit = int(min(phase_cap, max(16 * _MIB, fused_est)))
        out = pl.pallas_call(
            functools.partial(_fused_cam_kernel, mm_dtype=mm_dtype),
            out_shape=jax.ShapeDtypeStruct((b_pad, C, n_pad), dtype),
            grid=(num_b,),
            in_specs=[
                pl.BlockSpec(memory_space=pltpu.MemorySpace.SMEM),   # gamma (1,)
                pl.BlockSpec((bb, C, n_pad), lambda b: (b, 0, 0)),   # x slab
            ],
            out_specs=pl.BlockSpec((bb, C, n_pad), lambda b: (b, 0, 0)),
            compiler_params=pltpu.CompilerParams(
                dimension_semantics=("parallel",),
                vmem_limit_bytes=vmem_limit),
        )(gamma, xr)
    else:
        # ------------- two-phase fallback for large slabs --------------------
        tn = _round_up(N, _LANE) if N <= tile_n else tile_n

        def _phase_bytes(tn_):
            x_blk = bb * C * tn_ * itemsize
            attn_blk = bb * C * C * mm_itemsize
            acc = bb * C * C * 4
            p1 = 2 * x_blk + 2 * attn_blk + 3 * acc + 2 * _MIB
            p2 = 4 * x_blk + 2 * attn_blk + bb * C * tn_ * 4 + 2 * _MIB
            return max(p1, p2)

        while tn > _LANE and _phase_bytes(tn) > phase_cap:
            tn = _round_up(tn // 2, _LANE)
        n_pad = _round_up(N, tn)
        num_n = n_pad // tn
        if (b_pad, n_pad) != (B, N):
            xr = jnp.pad(xr, ((0, b_pad - B), (0, 0), (0, n_pad - N)))
        vmem_limit = int(min(phase_cap, max(16 * _MIB, _phase_bytes(tn))))

        # Phase 1: attention (b_pad, C, C), emitted in mm_dtype.
        attn = pl.pallas_call(
            functools.partial(_energy_attn_kernel, mm_dtype=mm_dtype),
            out_shape=jax.ShapeDtypeStruct((b_pad, C, C), mm_dtype),
            grid=(num_b, num_n),
            in_specs=[pl.BlockSpec((bb, C, tn), lambda b, n: (b, 0, n))],
            out_specs=pl.BlockSpec((bb, C, C), lambda b, n: (b, 0, 0)),
            scratch_shapes=[pltpu.VMEM((bb, C, C), jnp.float32)],
            compiler_params=pltpu.CompilerParams(
                dimension_semantics=("parallel", "arbitrary"),
                vmem_limit_bytes=vmem_limit),
        )(xr)

        # Phase 2: out = gamma * (attn @ X) + X.
        out = pl.pallas_call(
            functools.partial(_apply_attn_kernel, mm_dtype=mm_dtype),
            out_shape=jax.ShapeDtypeStruct((b_pad, C, n_pad), dtype),
            grid=(num_b, num_n),
            in_specs=[
                pl.BlockSpec(memory_space=pltpu.MemorySpace.SMEM),   # gamma (1,)
                pl.BlockSpec((bb, C, C), lambda b, n: (b, 0, 0)),    # attention
                pl.BlockSpec((bb, C, tn), lambda b, n: (b, 0, n)),   # x tiles
            ],
            out_specs=pl.BlockSpec((bb, C, tn), lambda b, n: (b, 0, n)),
            compiler_params=pltpu.CompilerParams(
                dimension_semantics=("parallel", "parallel"),
                vmem_limit_bytes=vmem_limit),
        )(gamma, attn, xr)

    if b_pad != B or n_pad != N:
        out = out[:B, :, :N]
    return out.reshape(B, C, H, W)


def cam_reference(x, gamma):
    B, C, H, W = x.shape
    pq = x.reshape(B, C, -1).astype(jnp.float32)                 # (B, C, N)
    energy = jnp.einsum('bcn,bdn->bcd', pq, pq)                  # (B, C, C)
    energy_new = jnp.max(energy, axis=-1, keepdims=True) - energy
    attn = jax.nn.softmax(energy_new, axis=-1)
    out = jnp.einsum('bcd,bdn->bcn', attn, pq).reshape(B, C, H, W)
    return (gamma[0] * out + x.astype(jnp.float32)).astype(x.dtype)


if __name__ == "__main__":
    key = jax.random.PRNGKey(0)
    B, C, H, W = 2, 4, 16, 16
    x = jax.random.normal(key, (B, C, H, W), dtype=jnp.float32)

    # nn.Parameter(torch.zeros(1)) -- deterministic init to zero.
    gamma = jnp.zeros((1,), dtype=jnp.float32)
    out = jax.block_until_ready(cam_module_forward(x, gamma))
    ref = cam_reference(x, gamma)
    assert out.shape == (B, C, H, W)
    assert jnp.allclose(out, ref, atol=1e-5, rtol=1e-5)

    # Hot path with nonzero gamma so out != x (fused fast path).
    gamma2 = jnp.array([0.5], dtype=jnp.float32)
    out2 = jax.block_until_ready(cam_module_forward(x, gamma2))
    ref2 = cam_reference(x, gamma2)
    assert jnp.allclose(out2, ref2, atol=1e-3, rtol=1e-3)

    # Non-multiple-of-128 spatial axis (N = 576 -> padded), fused path.
    x3 = jax.random.normal(jax.random.PRNGKey(1), (2, 8, 24, 24),
                           dtype=jnp.float32)
    out3 = jax.block_until_ready(cam_module_forward(x3, gamma2))
    ref3 = cam_reference(x3, gamma2)
    assert jnp.allclose(out3, ref3, atol=1e-3, rtol=1e-3)

    # Force the two-phase fallback (multi-tile N accumulation + apply).
    out4 = jax.block_until_ready(
        cam_module_forward(x3, gamma2, fused=False, tile_n=256))
    assert jnp.allclose(out4, ref3, atol=1e-3, rtol=1e-3)

    # bf16 input path (attention kept in bf16 end-to-end inside the kernel).
    xb = x3.astype(jnp.bfloat16)
    out5 = jax.block_until_ready(cam_module_forward(xb, gamma2))
    ref5 = cam_reference(xb, gamma2).astype(jnp.float32)
    assert jnp.allclose(out5.astype(jnp.float32), ref5, atol=3e-2, rtol=3e-2)

    print("KERNEL_OK")
</pallas_src>

<mosaic_0001>
module attributes {stable_mosaic.version = 11 : i64} {
  func.func @_fused_cam_kernel(%arg0: i32, %arg1: memref<1xf32, #tpu.memory_space<smem>>, %arg2: memref<1x4x256xf32, #tpu.memory_space<vmem>>, %arg3: memref<1x4x256xf32, #tpu.memory_space<vmem>>) attributes {dimension_semantics = [#tpu.dimension_semantics<parallel>], iteration_bounds = array<i64: 2>, scalar_prefetch = 0 : i64, scratch_operands = 0 : i64, tpu.core_type = #tpu.core_type<tc>, window_params = [{transform_indices = @transform_0, window_bounds = array<i64: 1>}, {transform_indices = @transform_1, window_bounds = array<i64: 1, 4, 256>}, {transform_indices = @transform_2, window_bounds = array<i64: 1, 4, 256>}]} {
    %c0 = arith.constant 0 : index
    %c0_0 = arith.constant 0 : index
    %c0_1 = arith.constant 0 : index
    %0 = vector.load %arg2[%c0, %c0_0, %c0_1] : memref<1x4x256xf32, #tpu.memory_space<vmem>>, vector<1x4x256xf32>
    "tpu.trace_start"() <{level = 10 : i32, message = "bcn,bdn->bcd"}> : () -> ()
    %cst = arith.constant dense<0.000000e+00> : vector<1x4x4xf32>
    %1 = tpu.matmul %0, %0, %cst {dimension_numbers = #tpu.dot_dimension_numbers<[2], [2], [1], [1], [0, 0, 0, 1, 1, 1], [0], [0]>} : vector<1x4x256xf32>, vector<1x4x256xf32>, vector<1x4x4xf32> -> vector<1x4x4xf32>
    "tpu.trace_stop"() : () -> ()
    %cst_2 = arith.constant dense<0x7F800000> : vector<1x4xf32>
    %2 = vector.multi_reduction <minimumf>, %1, %cst_2 [2] : vector<1x4x4xf32> to vector<1x4xf32>
    %3 = vector.shape_cast %2 : vector<1x4xf32> to vector<1x4x1xf32>
    %4 = vector.broadcast %3 : vector<1x4x1xf32> to vector<1x4x4xf32>
    %5 = arith.subf %4, %1 : vector<1x4x4xf32>
    %6 = math.exp %5 : vector<1x4x4xf32>
    %cst_3 = arith.constant dense<0.000000e+00> : vector<1x4xf32>
    %7 = vector.multi_reduction <add>, %6, %cst_3 [2] : vector<1x4x4xf32> to vector<1x4xf32>
    %8 = vector.shape_cast %7 : vector<1x4xf32> to vector<1x4x1xf32>
    %9 = vector.broadcast %8 : vector<1x4x1xf32> to vector<1x4x4xf32>
    %10 = arith.divf %6, %9 : vector<1x4x4xf32>
    "tpu.trace_start"() <{level = 10 : i32, message = "bcd,bdn->bcn"}> : () -> ()
    %cst_4 = arith.constant dense<0.000000e+00> : vector<1x4x256xf32>
    %11 = tpu.matmul %10, %0, %cst_4 {dimension_numbers = #tpu.dot_dimension_numbers<[2], [1], [1], [2], [0, 0, 0, 1, 1, 2], [0], [0]>} : vector<1x4x4xf32>, vector<1x4x256xf32>, vector<1x4x256xf32> -> vector<1x4x256xf32>
    "tpu.trace_stop"() : () -> ()
    %c0_5 = arith.constant 0 : index
    %12 = memref.load %arg1[%c0_5] : memref<1xf32, #tpu.memory_space<smem>>
    %13 = vector.broadcast %12 : f32 to vector<1x4x256xf32>
    %14 = arith.mulf %13, %11 : vector<1x4x256xf32>
    %15 = arith.addf %14, %0 : vector<1x4x256xf32>
    %c0_6 = arith.constant 0 : index
    %c0_7 = arith.constant 0 : index
    %c0_8 = arith.constant 0 : index
    %16 = vector.load %arg3[%c0_6, %c0_7, %c0_8] : memref<1x4x256xf32, #tpu.memory_space<vmem>>, vector<1x4x256xf32>
    tpu.vector_store %arg3[%c0_6, %c0_7, %c0_8], %15 {strides = array<i32>} : memref<1x4x256xf32, #tpu.memory_space<vmem>>, vector<1x4x256xf32>,
    return
  }
  func.func @transform_0(%arg0: i32) -> i32 {
    %c0_i32 = arith.constant 0 : i32
    %c0_i32_0 = arith.constant 0 : i32
    return %c0_i32 : i32
  }
  func.func @transform_1(%arg0: i32) -> (i32, i32, i32) {
    %c0_i32 = arith.constant 0 : i32
    %c0_i32_0 = arith.constant 0 : i32
    %c0_i32_1 = arith.constant 0 : i32
    return %arg0, %c0_i32, %c0_i32_0 : i32, i32, i32
  }
  func.func @transform_2(%arg0: i32) -> (i32, i32, i32) {
    %c0_i32 = arith.constant 0 : i32
    %c0_i32_0 = arith.constant 0 : i32
    %c0_i32_1 = arith.constant 0 : i32
    return %arg0, %c0_i32, %c0_i32_0 : i32, i32, i32
  }
}

</mosaic_0001>

<bundles_post_ra>
// kernel: tpu_custom_call.1
= control target key start
LH: loop header
LB: loop body
LE: loop exit
PB: predicated region body
PF: predicated region fallthrough
CT: control target
= control target key end

     0   :  { %s716_s0 = inlined_call_operand.<no memory space> [shape: f32[1], index: 0, kind: input, shape index: {}]   ;;  %s717_s1 = inlined_call_operand.hbm [shape: f32[2,4,256], index: 1, kind: input, shape index: {}]   ;;  %s718_s2 = inlined_call_operand.hbm [shape: f32[2,4,256], index: 2, kind: output, shape index: {}]  }
   0x1   :  { %7 = sst [smem:[#allocation2]] %s716_s0 }
   0x2   :  { %8 = vsyncpa [#allocation4], 0 }
   0x3   :  { %10 = vsyncpa [#allocation4 + $0x1], 0 }
   0x4   :  { %11 = vsyncpa [#allocation5], 0 }
   0x5   :  { %13 = vsyncpa [#allocation5 + $0x1], 0  ;;  %s582_s11 = smov 0   ;;  %s584_s12 = smov 0  }
   0x6   :  { %s586_s13 = smov 0   ;;  %s588_s14 = smov 0  }
   0x7 LB: > { %s603_s0 = sadd.s32 4294967295, %s562_s14   ;;  %s396_s15 = sadd.s32 4294967294, %s562_s14   ;;  %s562_s14 = sphi %s588_s14, %s728_s14   ;;  %s558_s13 = sphi %s586_s13, %s727_s13   ;;  %s554_s12 = sphi %s584_s12, %s726_s12   ;;  %s550_s11 = sphi %s582_s11, %s725_s11  }
   0x8   : > { %s607_s16 = sadd.s32 1, %s562_s14   ;;  %s47_s17 = sadd.s32 1, %s558_s13 }
   0x9   : > { %s44_s18 = ssub.s32 %s562_s14, %s607_s16  ;;  %p54_p0 = scmp.ne.s32.totalorder %s558_s13, %s554_s12 }
   0xa   : > { %p45_p1 = scmp.eq.s32.totalorder %s44_s18, 0  ;;  %p55_p2 = scmp.eq.s32.totalorder %s562_s14, 0 }
   0xb   : > { %p60_p3 = scmp.ne.s32.totalorder %s554_s12, %s550_s11  ;;  %p61_p4 = scmp.eq.s32.totalorder %s603_s0, 0 }
   0xc   : > { %s619_s19 = scalar_select %p45_p1, %s558_s13, %s47_s17  }
   0xd   : > { %p621_p5 = por %p55_p2, %p54_p0  ;;  %p625_p6 = por %p61_p4, %p60_p3 }
   0xe   : > { %p84_p7 = scmp.eq.s32.totalorder %s603_s0, 1  ;;  %p90_p8 = scmp.eq.s32.totalorder %s396_s15, 1 }
   0xf   : > { %p428_p10 = scmp.lt.s32.totalorder %s562_s14, 2  ;;  %s113_s24 = sand.u32 1, %s558_s13  }
  0x10   : > { %p632_p11 = por %p84_p7, %p54_p0  ;;  %p636_p12 = por %p90_p8, %p60_p3 }
  0x11   : > { %s414_s25 = sshll.u32 %s562_s14, 3  ;;  %s399_s26 = sshll.u32 %s113_s24, 3 }
  0x12   : > { %s122_s29 = scalar_lea.hbm %s717_s1, %s414_s25  ;;  %s117_s3 = scalar_lea.vmem [#allocation3], %s399_s26 }
  0x13   : > { %s124_s30 = sshll.u32 %s122_s29, 4  ;;  %s126_s4 = sshll.u32 %s117_s3, 4  ;;  %s125_s30 = int_to_ptr.hbm [resolvable:$true] %s124_s30  ;;  %s127_s4 = int_to_ptr.vmem [resolvable:$true] %s126_s4 }
  0x14   : > { %p647_p13 = pnand %p428_p10, %p621_p5  ;;  %p402_p0 = scmp.ge.s32.totalorder %s562_s14, 1 }
  0x15   : > { %p131_p1 = scmp.lt.s32.totalorder %s562_s14, 3  ;;  %s114_s6 = scalar_lea.sflag [#allocation4], %s113_s24 }
  0x16   : > { %s466_s7 = sshra.s32 %s125_s30, 4  ;;  %p470_p3 = pneg %p647_p13  ;;  %s467_s7 = int_to_ptr.hbm [resolvable:$true] %s466_s7 }
  0x17   : > { %s468_s8 = scalar_lea.hbm %s467_s7, 8  ;;  %s473_s15 = scalar_lea.hbm %s717_s1, 16 }
  0x18   : > { %p469_p2 = scmp.ne.s32.totalorder %s467_s7, %s468_s8  ;;  %p474_p5 = scmp.lt.s32.totalorder %s467_s7, %s717_s1 }
  0x19   : > { %p475_p8 = scmp.lt.s32.totalorder %s473_s15, %s468_s8 }
  0x1a   : > { %p471_p4 = pnand %p470_p3, %p469_p2 }
  0x1b   : > { %p476_p10 = por %p475_p8, %p474_p5 }
  0x1c   : > { %p472_p7 = pneg %p471_p4 }
  0x1e   : > { %p477_p9 = pnand %p476_p10, %p472_p7 }
  0x20   : > { %480 = shalt.err (!%p477_p9)
}
  0x21   : > { %423 = dma.hbm_to_vmem [thread:$0]  (!%p647_p13), %s125_s30, 128, %s127_s4, %s114_s6  }
  0x22   : > { %p132_p2 = pnand %p402_p0, %p131_p1 }
  0x23   : > { %s668_s20 = sand.u32 (!%p132_p2), 1, %s554_s12  }
  0x24   : > { %135 = sbr.rel (%p132_p2) target bundleno = 596 (0x254), region = 28  ;;  %s403_s24 = sshll.u32 (!%p132_p2), %s668_s20, 3 }
  0x25   : > { %s138_s25 = scalar_lea.sflag (!%p132_p2), [#allocation4], %s668_s20  ;;  %s141_s26 = scalar_lea.vmem (!%p132_p2), [#allocation3], %s403_s24 }
  0x29   : > { %541 = dma.done.wait (%p625_p6), %s138_s25, 128  }
  0x2a   : > { %543 = vsyncadd (%p625_p6), %s138_s25, 4294967168  ;;  %v163_v0 = vld [vmem:[%s141_s26] sm:$0xff]  ;;  %vm215_vm0 = vcmask 27648   ;;  %vm247_vm1 = vcmask 1043456   ;;  %vm243_vm6 = vcmask 31744   ;;  %s292_s21 = sld [smem:[#allocation2]] }
  0x2b   : > { %165 = vst [vmem:[#allocation1] ss:$2 sm:$0xff] %v163_v0  ;;  %s415_s27 = sshll.u32 %s603_s0, 3  ;;  %s162_s3 = scalar_lea.vmem [#allocation6], %s403_s24 }
  0x2c   : > { %s321_s30 = scalar_lea.hbm %s718_s2, %s415_s27  ;;  %s323_s4 = sshll.u32 %s162_s3, 4  ;;  %s324_s4 = int_to_ptr.vmem [resolvable:$true] %s323_s4 }
  0x2d   : > { %s325_s5 = sshll.u32 %s321_s30, 4  ;;  %s310_s0 = scalar_lea.sflag [#allocation5], %s668_s20  ;;  %s326_s5 = int_to_ptr.hbm [resolvable:$true] %s325_s5 }
  0x2e   : > { %s510_s6 = sshra.s32 %s326_s5, 4  ;;  %s516_s10 = scalar_lea.hbm %s718_s2, 16  ;;  %s511_s6 = int_to_ptr.hbm [resolvable:$true] %s510_s6 }
  0x2f   : > { %s512_s7 = scalar_lea.hbm %s511_s6, 8  ;;  %p517_p0 = scmp.lt.s32.totalorder %s511_s6, %s718_s2 }
  0x30   : > { %v293_v28 = vstv %s292_s21  ;;  %p513_p6 = scmp.ne.s32.totalorder %s511_s6, %s512_s7  ;;  %p518_p1 = scmp.lt.s32.totalorder %s516_s10, %s512_s7 }
  0x32   : > { %v166_v1 = vld.sshfl [vmem:[#allocation1] sm:$0xff pattern:$0x75316420]  ;;  %v167_v2 = vld.sshfl [vmem:[#allocation1 + $0x8] sm:$0xff pattern:$0x75316420]  ;;  %p514_p9 = pnand %p513_p6, %p632_p11  ;;  %p519_p3 = por %p518_p1, %p517_p0 }
  0x33   : > { %170 = vst [vmem:[#allocation1] ss:$2 sm:$0xff] %v163_v0 }
  0x34   : > { %p515_p13 = pneg %p514_p9 }
  0x36   : > { %p520_p4 = pnand %p519_p3, %p515_p13 }
  0x3a   : > { %v171_v3 = vld.sshfl [vmem:[#allocation1] sm:$0xff pattern:$0x75316420]  ;;  %v172_v4 = vld.sshfl [vmem:[#allocation1 + $0x8] sm:$0xff pattern:$0x75316420] }
  0x3b   : > { %190 = vmatpush.xpose.msra.mxu0 %v171_v3  ;;  %210 = vmatpush.xpose.msra.mxu1 %v172_v4  ;;  %240 = vst [vmem:[#allocation1] ss:$2 sm:$0xff] %v163_v0 }
  0x3e   : > { %191 = vmatmul.f32.vlgmr.msra.gmra.mxu0 %v166_v1  ;;  %211 = vmatmul.f32.vlgmr.msra.gmra.mxu1 %v167_v2 }
  0x42   : > { %v241_v14 = vld.sshfl [vmem:[#allocation1] sm:$0xff pattern:$0x75316420]  ;;  %v242_v15 = vld.sshfl [vmem:[#allocation1 + $0x8] sm:$0xff pattern:$0x75316420] }
  0x43   : > { %405 = vmatpush.msk.msra.mxu2 %vm247_vm1, %v241_v14  ;;  %407 = vmatpush.msk.msra.mxu3 %vm247_vm1, %v242_v15  ;;  %296 = vst [vmem:[#allocation1] ss:$2 sm:$0xff] %v163_v0 }
  0x4a   : > { %v298_v31 = vld.sshfl [vmem:[#allocation1 + $0x8] sm:$0xff pattern:$0x75316420]  ;;  %v297_v34 = vld.sshfl [vmem:[#allocation1] sm:$0xff pattern:$0x75316420] }
  0xbb   : > { %v192_v5 = vpop.f32.mrf.mxu0  ;;  %v212_v6 = vpop.f32.mrf.mxu1 }
  0xbc   : > { %v213_v7 = vadd.f32 %v212_v6, %v192_v5 }
  0xbe   : > { %v216_v8 = vsel %vm215_vm0, %v213_v7, inf }
  0xbf   : > { %217 = vmin.xlane.f32.xlu0 %v216_v8 }
 0x132   : > { %v218_v9 = vpop.xlane.xlu0 %217 }
 0x133   : > { %v219_v10 = vsub.f32 %v218_v9, %v213_v7 }
 0x135   : > { %v220_v11 = vmul.f32 1.442695, %v219_v10 }
 0x137   : > { %462 = vpow2.f32 %v220_v11 }
 0x13d   : > { %v463_v12 = vpop.eup %462 }
 0x13e   : > { %v222_v13 = vsel %vm215_vm0, %v463_v12, 0.0 }
 0x13f   : > { %223 = vadd.xlane.f32.xlu0 %v222_v13 }
 0x1b2   : > { %v224_v16 = vpop.xlane.xlu0 %223 }
 0x1b3   : > { %464 = vrcp.f32 %v224_v16  ;;  %v236_v20 = vand.u32 2147483648, %v224_v16  ;;  %v234_v22 = vand.u32 2147483647, %v224_v16  ;;  %vm230_vm3 = vweird.f32 %v224_v16 }
 0x1b5   : > { %v237_v24 = vor.u32 1.1754944e-38, %v236_v20  ;;  %vm235_vm5 = vcmp.eq.f32.partialorder %v234_v22, 8.507059e+37 }
 0x1b9   : > { %v465_v17 = vpop.eup %464 }
 0x1ba   : > { %v226_v18 = vmul.f32 %v465_v17, %v224_v16  ;;  %vm231_vm2 = vweird.f32 %v465_v17 }
 0x1bb   : > { %vm232_vm4 = vmor %vm230_vm3, %vm231_vm2 }
 0x1bc   : > { %v227_v19 = vsub.f32 1.0, %v226_v18 }
 0x1be   : > { %v228_v21 = vmul.f32 %v465_v17, %v227_v19 }
 0x1c0   : > { %v229_v23 = vadd.f32 %v465_v17, %v228_v21 }
 0x1c2   : > { %v233_v25 = vsel %vm232_vm4, %v465_v17, %v229_v23 }
 0x1c3   : > { %v238_v26 = vsel %vm235_vm5, %v237_v24, %v233_v25 }
 0x1c4   : > { %v239_v27 = vmul.f32 %v463_v12, %v238_v26 }
 0x1c6   : > { %406 = vmatmul.msk.f32.vlgmr.msra.gmra.mxu2 %vm243_vm6, %v239_v27  ;;  %408 = vmatmul.msk.f32.vlgmr.msra.gmra.mxu3 %vm243_vm6, %v239_v27 }
 0x249   : > { %v269_v29 = vpop.f32.mrf.mxu2  ;;  %v289_v30 = vpop.f32.mrf.mxu3 }
 0x24a   : > { %v294_v32 = vmul.f32 %v293_v28, %v269_v29  ;;  %v295_v33 = vmul.f32 %v293_v28, %v289_v30 }
 0x24c   : > { %v302_v35 = vadd.f32 %v298_v31, %v295_v33  ;;  %v301_v36 = vadd.f32 %v297_v34, %v294_v32 }
 0x24e   : > { %v305_v37 = vrot.slane %v302_v35, 4 }
 0x250   : > { %v306_v38 = vsel %vm247_vm1, %v301_v36, %v305_v37 }
 0x251   : > { %308 = vst [vmem:[%s162_s3] sm:$0xff] %v306_v38 }
 0x252   : > { %523 = shalt.err (!%p520_p4)
}
 0x253   : > { %418 = dma.vmem_to_hbm [thread:$0]  (%p632_p11), %s324_s4, 128, %s326_s5, %s310_s0  }
 0x254 PF: > { %s337_s18 = sand.u32 1, %s550_s11   ;;  %p724_p7 = scmp.ge.s32.totalorder %s562_s14, 2 }
 0x255   : > { %s338_s20 = scalar_lea.sflag [#allocation5], %s337_s18 }
 0x256   : > { %p425_p5 = pnand %p724_p7, %p636_p12 }
 0x258   : > { %p426_p8 = pneg %p425_p5 }
 0x25a   : > { %545 = dma.done.wait (%p426_p8), %s338_s20, 128  }
 0x25b   : > { %547 = vsyncadd (%p426_p8), %s338_s20, 4294967168  ;;  %p16_p10 = scmp.ge.s32.totalorder %s607_s16, 4   ;;  %s725_s11 = smov %s554_s12 }
 0x25c   : > { %s726_s12 = smov %s558_s13  ;;  %s727_s13 = smov %s619_s19 }
 0x25d   : > { %s728_s14 = smov %s607_s16  ;;  %18 = sbr.rel (!%p16_p10) target bundleno = 7 (0x7), region = 73 }
 0x262   :  { %344 = vsyncpa [#allocation4], 1 }
 0x263   :  { %346 = vsyncpa [#allocation4 + $0x1], 1 }
 0x264   :  { %347 = vsyncpa [#allocation5], 1 }
 0x265   :  { %349 = vsyncpa [#allocation5 + $0x1], 1 }

</bundles_post_ra>
